<compile_context>
chip_gen: v5e
topology: v5e:2x2
jax: 0.10.0
libtpu: 0.0.40
codegen_flags: <defaults>
</compile_context>

<pallas_src>
import functools
import math

import jax
import jax.numpy as jnp
from jax.experimental import pallas as pl
from jax.experimental.pallas import tpu as pltpu

LANES = 128             # TPU lane width
MAX_TILE_B = 4096       # max batch rows per grid step (multiple of 1024)
SINGLE_TILE_MAX = 2048  # up to this padded batch size, use a single grid step


def _round_up(x, m):
    return ((x + m - 1) // m) * m


def _activation_fn(name):
    if name == "Tanh":
        return jnp.tanh
    elif name == "Sigmoid":
        return jax.nn.sigmoid
    elif name == "ReLU":
        return lambda x: jnp.maximum(x, 0.0)
    raise ValueError(f"unknown activation {name}")


# ----------------------------------------------------------------------------
# kernel
# ----------------------------------------------------------------------------
def _mlp_kernel(*refs, n_layers, activation, lane, off_last, off_bias):
    """refs (n_layers == 1):  x_ref, wf_ref, bl_ref, out_ref
       refs (n_layers  > 1):  x_ref, wf_ref, pk_ref, bl_ref, out_ref

       x_ref  : (tile_b, F)           features tile (f32)
       wf_ref : (F, lane)             first-layer weight; (1, F) if n_layers==1
       pk_ref : (R, lane)             packed mid weights / last row / biases
       bl_ref : (1, 1) in SMEM        last-layer bias scalar
       out_ref: (tile_b // 128, 128)  batch-on-lanes packed sigmoid outputs
    """
    act = _activation_fn(activation)

    if n_layers == 1:
        x_ref, wf_ref, bl_ref, out_ref = refs
        h = x_ref[...]                                         # (tile_b, F)
        w_row = wf_ref[...].astype(jnp.float32)                # (1, F)
    else:
        x_ref, wf_ref, pk_ref, bl_ref, out_ref = refs
        mxu_dtype = wf_ref.dtype                               # f32 or bf16
        x = x_ref[...]
        # fc1 on the MXU (weights VMEM-resident, f32 accumulation).
        b0 = pk_ref[off_bias:off_bias + 1, :].astype(jnp.float32)
        h = act(jnp.dot(x.astype(mxu_dtype), wf_ref[...],
                        preferred_element_type=jnp.float32) + b0)
        # Middle hidden layers (statically unrolled; <= 2 for this module).
        # NOTE: activations run over the full 128-lane padded hidden width —
        # redundant EUP work, harmless while the kernel is memory-bound.
        for li in range(1, n_layers - 1):
            w = pk_ref[(li - 1) * lane:li * lane, :]
            b = pk_ref[off_bias + 8 * li:off_bias + 8 * li + 1, :].astype(jnp.float32)
            h = act(jnp.dot(h.astype(mxu_dtype), w,
                            preferred_element_type=jnp.float32) + b)
        w_row = pk_ref[off_last:off_last + 1, :].astype(jnp.float32)   # (1, lane)

    # Final Linear(*, 1): VPU multiply + lane reduction (no N=1 MXU matmul).
    y = jnp.sum(h * w_row, axis=-1, keepdims=True) + bl_ref[0, 0]      # (tile_b, 1)

    # Batch-on-lanes packing: 128 real results per output row (unmasked vst);
    # just a tiny sublane->lane relayout (~tile_b/1024 vregs of XLU work).
    out_ref[...] = jax.nn.sigmoid(y).reshape(out_ref.shape)


# ----------------------------------------------------------------------------
# one-time parameter preparation (transpose / pad / pack)
# ----------------------------------------------------------------------------
def prepare_params(params, mxu_dtype=jnp.float32):
    """params: list of (W[out, in], b[out]) PyTorch-style tensors.

    Transposes, pads and packs the weights ONCE so no per-forward XLA
    transpose/pad ops remain.  Returns (w_first, packed, b_last, meta).
    mxu_dtype=jnp.bfloat16 stores the MXU-side weights as bf16 (bf16-native
    MXUs on v6e/v7x, halves resident VMEM); accumulation stays f32 in-kernel.
    """
    n_layers = len(params)
    outs = [int(w.shape[0]) for (w, _) in params]
    ins = [int(w.shape[1]) for (w, _) in params]
    assert outs[-1] == 1, "module output size is 1"

    if n_layers == 1:
        # Single Linear(input_size, 1): pure VPU path, no packed buffer shipped.
        w_first = jnp.asarray(params[0][0], jnp.float32)          # (1, input_size)
        packed = None
        lane, off_last, off_bias = LANES, 0, 0
    else:
        lane = max([LANES] + [_round_up(o, LANES) for o in outs[:-1]])

        # first-layer weight: transpose to (in, out), pad out-dim to `lane`
        w0 = jnp.asarray(params[0][0], jnp.float32).T             # (in0, out0)
        w_first = jnp.zeros((ins[0], lane), jnp.float32).at[:, :outs[0]].set(w0)

        blocks = []
        # middle hidden layers: (lane, lane) zero-padded blocks
        for l in range(1, n_layers - 1):
            wl = jnp.asarray(params[l][0], jnp.float32).T         # (in_l, out_l)
            blk = jnp.zeros((lane, lane), jnp.float32)
            blocks.append(blk.at[:ins[l], :outs[l]].set(wl))
        off_last = (n_layers - 2) * lane

        # last-layer weight as a single padded row (8-row block, row 0 real)
        w_row = jnp.zeros((8, lane), jnp.float32)
        w_row = w_row.at[0, :ins[-1]].set(
            jnp.asarray(params[-1][0], jnp.float32)[0])
        blocks.append(w_row)
        off_bias = off_last + 8

        # hidden-layer biases, one 8-row (sublane-aligned) block each
        for l in range(n_layers - 1):
            bb = jnp.zeros((8, lane), jnp.float32)
            blocks.append(bb.at[0, :outs[l]].set(
                jnp.asarray(params[l][1], jnp.float32)))

        packed = jnp.concatenate(blocks, axis=0)
        w_first = w_first.astype(mxu_dtype)
        packed = packed.astype(mxu_dtype)

    b_last = jnp.asarray(params[-1][1], jnp.float32).reshape(1, 1)   # SMEM scalar
    meta = dict(n_layers=n_layers, lane=lane,
                off_last=off_last, off_bias=off_bias)
    return w_first, packed, b_last, meta


# ----------------------------------------------------------------------------
# tiling choice
# ----------------------------------------------------------------------------
def _choose_tiling(B, F):
    """Return (tile_b, padded_B).  tile_b is a multiple of 128; when the grid
    has more than one step, tile_b is a multiple of 1024 so the packed output
    block (tile_b // 128, 128) keeps an 8-aligned sublane dimension."""
    b128 = _round_up(B, LANES)
    if b128 <= SINGLE_TILE_MAX:
        return b128, b128                       # one grid step
    # >= ~4 grid steps for large B: keeps both v7x TensorCores fed while large
    # tiles amortize the ~0.35 us per-step overhead.
    tile_b = min(MAX_TILE_B, _round_up(pl.cdiv(B, 4), 1024))
    # keep the double-buffered feature DMA under ~8 MiB of scoped VMEM
    max_rows = max(1024, ((8 << 20) // max(F * 4 * 2, 1)) // 1024 * 1024)
    tile_b = min(tile_b, max_rows)
    return tile_b, _round_up(B, tile_b)


# ----------------------------------------------------------------------------
# forward
# ----------------------------------------------------------------------------
def mlp_forward(features, prepared, activation):
    """features: [B, input_size] float32 -> [B, 1] float32 (sigmoid output)."""
    w_first, packed, b_last, meta = prepared
    B, F = features.shape

    tile_b, B_pad = _choose_tiling(B, F)
    if B_pad != B:
        features = jnp.pad(features, ((0, B_pad - B), (0, 0)))
    grid = (B_pad // tile_b,)
    tile_rows = tile_b // LANES

    kernel = functools.partial(_mlp_kernel, activation=activation, **meta)

    # TODO(synk): if profiling shows exposed feature DMA at large grids, deepen
    # the features pipeline with pipeline_mode=pl.Buffered(3); also consider
    # shipping features as bf16 in HBM (halves the dominant input stream).
    in_specs = [
        pl.BlockSpec((tile_b, F), lambda i: (i, 0)),          # pipelined features
        pl.BlockSpec(w_first.shape, lambda i: (0, 0)),        # VMEM-resident weight
    ]
    args = [features, w_first]
    if packed is not None:
        in_specs.append(pl.BlockSpec(packed.shape, lambda i: (0, 0)))
        args.append(packed)
    in_specs.append(pl.BlockSpec(memory_space=pltpu.SMEM))    # scalar last bias
    args.append(b_last)

    out = pl.pallas_call(
        kernel,
        out_shape=jax.ShapeDtypeStruct((B_pad // LANES, LANES), jnp.float32),
        grid=grid,
        in_specs=in_specs,
        out_specs=pl.BlockSpec((tile_rows, LANES), lambda i: (i, 0)),
        compiler_params=pltpu.CompilerParams(
            dimension_semantics=("parallel",)),
    )(*args)

    # Batch-on-lanes packed rows flatten back to batch order for free.
    return out.reshape(B_pad, 1)[:B]


# ----------------------------------------------------------------------------
# reference & init
# ----------------------------------------------------------------------------
def init_mlp_params(key, input_size, hidden_layers):
    """PyTorch-style Linear init: U(-1/sqrt(fan_in), 1/sqrt(fan_in))."""
    dims = [input_size] + list(hidden_layers or []) + [1]
    params = []
    for i in range(len(dims) - 1):
        fan_in, fan_out = dims[i], dims[i + 1]
        key, kw, kb = jax.random.split(key, 3)
        bound = 1.0 / math.sqrt(fan_in)
        w = jax.random.uniform(kw, (fan_out, fan_in), jnp.float32, -bound, bound)
        b = jax.random.uniform(kb, (fan_out,), jnp.float32, -bound, bound)
        params.append((w, b))
    return params


def mlp_reference(features, params, activation):
    """Pure-JAX reference replicating the PyTorch forward."""
    act = _activation_fn(activation)
    x = features
    n = len(params)
    for i, (w, b) in enumerate(params):
        x = x @ w.T + b
        if i < n - 1:
            x = act(x)
    return jax.nn.sigmoid(x)


# ----------------------------------------------------------------------------
if __name__ == "__main__":
    configs = [
        # (batch, input_size, hidden_layers, activation, mxu_dtype, tol)
        (8,    32, [32, 16], "ReLU",    jnp.float32,  1e-5),  # 2 hidden layers
        (6,    32, [24],     "Sigmoid", jnp.float32,  1e-5),  # 1 hidden layer
        (8,    32, None,     "Tanh",    jnp.float32,  1e-5),  # no hidden layers
        (2500, 32, [32, 16], "ReLU",    jnp.float32,  1e-5),  # multi-tile grid
        (512,  64, [64, 32], "Tanh",    jnp.bfloat16, 3e-2),  # bf16 MXU (v6e/v7x)
    ]

    for (batch, input_size, hidden_layers, activation, mxu_dtype, tol) in configs:
        key = jax.random.PRNGKey(0)
        key, kx = jax.random.split(key)
        features = jax.random.normal(kx, (batch, input_size), jnp.float32)

        params = init_mlp_params(key, input_size, hidden_layers)
        prepared = prepare_params(params, mxu_dtype=mxu_dtype)

        out = jax.block_until_ready(mlp_forward(features, prepared, activation))
        ref = mlp_reference(features, params, activation)

        assert out.shape == (batch, 1), (out.shape, batch)
        assert jnp.allclose(out, ref, atol=tol, rtol=tol), (
            activation, hidden_layers, str(mxu_dtype),
            float(jnp.max(jnp.abs(out - ref))))

    print("KERNEL_OK")
</pallas_src>

<mosaic_0001>
module attributes {stable_mosaic.version = 11 : i64} {
  func.func @_mlp_kernel(%arg0: i32, %arg1: memref<128x32xf32, #tpu.memory_space<vmem>>, %arg2: memref<32x128xf32, #tpu.memory_space<vmem>>, %arg3: memref<152x128xf32, #tpu.memory_space<vmem>>, %arg4: memref<1x1xf32, #tpu.memory_space<smem>>, %arg5: memref<1x128xf32, #tpu.memory_space<vmem>>) attributes {dimension_semantics = [#tpu.dimension_semantics<parallel>], iteration_bounds = array<i64: 1>, scalar_prefetch = 0 : i64, scratch_operands = 0 : i64, tpu.core_type = #tpu.core_type<tc>, window_params = [{transform_indices = @transform_0, window_bounds = array<i64: 128, 32>}, {pipeline_mode = #tpu.pipeline_mode<synchronous>, transform_indices = @transform_1, window_bounds = array<i64: 32, 128>}, {pipeline_mode = #tpu.pipeline_mode<synchronous>, transform_indices = @transform_2, window_bounds = array<i64: 152, 128>}, {transform_indices = @transform_3, window_bounds = array<i64: 1, 1>}, {transform_indices = @transform_4, window_bounds = array<i64: 1, 128>}]} {
    %c0 = arith.constant 0 : index
    %c0_0 = arith.constant 0 : index
    %0 = vector.load %arg1[%c0, %c0_0] : memref<128x32xf32, #tpu.memory_space<vmem>>, vector<128x32xf32>
    %c136 = arith.constant 136 : index
    %c0_1 = arith.constant 0 : index
    %1 = vector.load %arg3[%c136, %c0_1] : memref<152x128xf32, #tpu.memory_space<vmem>>, vector<1x128xf32>
    %c0_2 = arith.constant 0 : index
    %c0_3 = arith.constant 0 : index
    %2 = vector.load %arg2[%c0_2, %c0_3] : memref<32x128xf32, #tpu.memory_space<vmem>>, vector<32x128xf32>
    %cst = arith.constant dense<0.000000e+00> : vector<128x128xf32>
    %3 = tpu.matmul %0, %2, %cst {dimension_numbers = #tpu.dot_dimension_numbers<[1], [0], [0], [1], [0, 0, 1, 1], [], []>} : vector<128x32xf32>, vector<32x128xf32>, vector<128x128xf32> -> vector<128x128xf32>
    %4 = vector.broadcast %1 : vector<1x128xf32> to vector<128x128xf32>
    %5 = arith.addf %3, %4 : vector<128x128xf32>
    %cst_4 = arith.constant 0.000000e+00 : f32
    %6 = vector.broadcast %cst_4 : f32 to vector<128x128xf32>
    %7 = arith.maximumf %5, %6 : vector<128x128xf32>
    %c0_5 = arith.constant 0 : index
    %c0_6 = arith.constant 0 : index
    %8 = vector.load %arg3[%c0_5, %c0_6] : memref<152x128xf32, #tpu.memory_space<vmem>>, vector<128x128xf32>
    %c144 = arith.constant 144 : index
    %c0_7 = arith.constant 0 : index
    %9 = vector.load %arg3[%c144, %c0_7] : memref<152x128xf32, #tpu.memory_space<vmem>>, vector<1x128xf32>
    %cst_8 = arith.constant dense<0.000000e+00> : vector<128x128xf32>
    %10 = tpu.matmul %7, %8, %cst_8 {dimension_numbers = #tpu.dot_dimension_numbers<[1], [0], [0], [1], [0, 0, 1, 1], [], []>} : vector<128x128xf32>, vector<128x128xf32>, vector<128x128xf32> -> vector<128x128xf32>
    %11 = vector.broadcast %9 : vector<1x128xf32> to vector<128x128xf32>
    %12 = arith.addf %10, %11 : vector<128x128xf32>
    %cst_9 = arith.constant 0.000000e+00 : f32
    %13 = vector.broadcast %cst_9 : f32 to vector<128x128xf32>
    %14 = arith.maximumf %12, %13 : vector<128x128xf32>
    %c128 = arith.constant 128 : index
    %c0_10 = arith.constant 0 : index
    %15 = vector.load %arg3[%c128, %c0_10] : memref<152x128xf32, #tpu.memory_space<vmem>>, vector<1x128xf32>
    %16 = vector.broadcast %15 : vector<1x128xf32> to vector<128x128xf32>
    %17 = arith.mulf %14, %16 : vector<128x128xf32>
    %cst_11 = arith.constant dense<0.000000e+00> : vector<128xf32>
    %18 = vector.multi_reduction <add>, %17, %cst_11 [1] : vector<128x128xf32> to vector<128xf32>
    %19 = vector.shape_cast %18 : vector<128xf32> to vector<128x1xf32>
    %c0_12 = arith.constant 0 : index
    %c0_13 = arith.constant 0 : index
    %20 = memref.load %arg4[%c0_12, %c0_13] : memref<1x1xf32, #tpu.memory_space<smem>>
    %21 = vector.broadcast %20 : f32 to vector<128x1xf32>
    %22 = arith.addf %19, %21 : vector<128x1xf32>
    %23 = arith.negf %22 : vector<128x1xf32>
    %24 = math.exp %23 : vector<128x1xf32>
    %cst_14 = arith.constant 1.000000e+00 : f32
    %25 = vector.broadcast %cst_14 : f32 to vector<128x1xf32>
    %26 = arith.addf %25, %24 : vector<128x1xf32>
    %27 = arith.divf %25, %26 : vector<128x1xf32>
    %28 = vector.shape_cast %27 : vector<128x1xf32> to vector<1x128xf32>
    %c0_15 = arith.constant 0 : index
    %c0_16 = arith.constant 0 : index
    %29 = vector.load %arg5[%c0_15, %c0_16] : memref<1x128xf32, #tpu.memory_space<vmem>>, vector<1x128xf32>
    tpu.vector_store %arg5[%c0_15, %c0_16], %28 {strides = array<i32>} : memref<1x128xf32, #tpu.memory_space<vmem>>, vector<1x128xf32>,
    return
  }
  func.func @transform_0(%arg0: i32) -> (i32, i32) {
    %c0_i32 = arith.constant 0 : i32
    %c0_i32_0 = arith.constant 0 : i32
    return %arg0, %c0_i32 : i32, i32
  }
  func.func @transform_1(%arg0: i32) -> (i32, i32) {
    %c0_i32 = arith.constant 0 : i32
    %c0_i32_0 = arith.constant 0 : i32
    %c0_i32_1 = arith.constant 0 : i32
    return %c0_i32, %c0_i32_0 : i32, i32
  }
  func.func @transform_2(%arg0: i32) -> (i32, i32) {
    %c0_i32 = arith.constant 0 : i32
    %c0_i32_0 = arith.constant 0 : i32
    %c0_i32_1 = arith.constant 0 : i32
    return %c0_i32, %c0_i32_0 : i32, i32
  }
  func.func @transform_3(%arg0: i32) -> (i32, i32) {
    %c0_i32 = arith.constant 0 : i32
    %c0_i32_0 = arith.constant 0 : i32
    %c0_i32_1 = arith.constant 0 : i32
    return %c0_i32, %c0_i32_0 : i32, i32
  }
  func.func @transform_4(%arg0: i32) -> (i32, i32) {
    %c0_i32 = arith.constant 0 : i32
    %c0_i32_0 = arith.constant 0 : i32
    return %arg0, %c0_i32 : i32, i32
  }
}

</mosaic_0001>

<bundles_post_ra>
// kernel: tpu_custom_call.1
= control target key start
LH: loop header
LB: loop body
LE: loop exit
PB: predicated region body
PF: predicated region fallthrough
CT: control target
= control target key end

     0   :  { %10 = vsyncpa [#allocation4], 0  ;;  %s1576_s0 = inlined_call_operand.vmem [shape: f32[128,32], index: 0, kind: input, shape index: {}]   ;;  %s1577_s1 = inlined_call_operand.hbm [shape: f32[32,128], index: 1, kind: input, shape index: {}]   ;;  %s1578_s2 = inlined_call_operand.vmem [shape: f32[152,128], index: 2, kind: input, shape index: {}]   ;;  %s1579_s3 = inlined_call_operand.<no memory space> [shape: f32[1,1], index: 3, kind: input, shape index: {}]   ;;  %s1580_s4 = inlined_call_operand.hbm [shape: f32[1,128], index: 4, kind: output, shape index: {}]  }
   0x1   :  { %11 = vsyncpa [#allocation5], 0  ;;  %s18_s17 = sshll.u32 %s1577_s1, 4  ;;  %s947_s18 = smov [#allocation3]   ;;  %s19_s17 = int_to_ptr.hbm [resolvable:$true] %s18_s17 }
   0x2   :  { %s20_s19 = sshll.u32 %s947_s18, 4  ;;  %s948_s20 = smov 128   ;;  %s21_s19 = int_to_ptr.vmem [resolvable:$true] %s20_s19 }
   0x3   :  { %s949_s21 = smov 8  }
   0x4   :  { %26 = dma.hbm_to_vmem [thread:$0]  %s19_s17, 512, %s21_s19, [#allocation4], %s948_s20, %s948_s20, %s949_s21  }
   0x5   :  { %943 = dma.done.wait [#allocation4], 512  }
   0x6   :  { %944 = vsyncadd [#allocation4], 4294966784  ;;  %v55_v0 = vld [vmem:[#allocation3 + $0x18] sm:$0xff]  ;;  %v54_v1 = vld [vmem:[#allocation3 + $0x10] sm:$0xff]  ;;  %vm57_vm0 = vcmask 261120   ;;  %vm679_vm13 = vcmask 130112  }
   0x7   :  { %118 = vmatpush.msra.mxu0 %v55_v0  ;;  %788 = vmatpush.msra.mxu3 %v55_v0  ;;  %v53_v2 = vld [vmem:[#allocation3 + $0x8] sm:$0xff]  ;;  %v52_v3 = vld [vmem:[#allocation3] sm:$0xff]  ;;  %v37_v6 = vld [vmem:[%s1576_s0 + $0x10] sm:$0xff]  ;;  %vm683_vm15 = vcmask 195712   ;;  %s746_s14 = sshll.u32 %s1580_s4, 4  ;;  %s747_s14 = int_to_ptr.hbm [resolvable:$true] %s746_s14 }
   0x8   :  { %v35_v4 = vld [vmem:[%s1576_s0] sm:$0xff]  ;;  %v36_v5 = vld [vmem:[%s1576_s0 + $0x8] sm:$0xff]  ;;  %v38_v7 = vld [vmem:[%s1576_s0 + $0x18] sm:$0xff] }
   0x9   :  { %119 = vmatpush.msra.mxu0 %v54_v1  ;;  %789 = vmatpush.msra.mxu3 %v54_v1  ;;  %v45_v8 = vld [vmem:[%s1576_s0 + $0x50] sm:$0xff]  ;;  %v39_v9 = vld [vmem:[%s1576_s0 + $0x20] sm:$0xff]  ;;  %v46_v10 = vld [vmem:[%s1576_s0 + $0x58] sm:$0xff] }
   0xa   :  { %v40_v11 = vld [vmem:[%s1576_s0 + $0x28] sm:$0xff]  ;;  %v47_v12 = vld [vmem:[%s1576_s0 + $0x60] sm:$0xff]  ;;  %v202_v13 = vld [vmem:[%s1578_s2 + $0x78] sm:$0xff] }
   0xb   :  { %120 = vmatpush.msra.mxu0 %v53_v2  ;;  %790 = vmatpush.msra.mxu3 %v53_v2  ;;  %v201_v14 = vld [vmem:[%s1578_s2 + $0x70] sm:$0xff]  ;;  %v200_v15 = vld [vmem:[%s1578_s2 + $0x68] sm:$0xff]  ;;  %v199_v17 = vld [vmem:[%s1578_s2 + $0x60] sm:$0xff] }
   0xc   :  { %205 = vmatpush.msra.mxu1 %v202_v13  ;;  %792 = vmatpush.msra.mxu2 %v202_v13  ;;  %v41_v16 = vld [vmem:[%s1576_s0 + $0x30] sm:$0xff]  ;;  %v48_v18 = vld [vmem:[%s1576_s0 + $0x68] sm:$0xff]  ;;  %v198_v19 = vld [vmem:[%s1578_s2 + $0x58] sm:$0xff] }
   0xd   :  { %121 = vmatpush.msra.mxu0 %v52_v3  ;;  %791 = vmatpush.msra.mxu3 %v52_v3  ;;  %v197_v20 = vld [vmem:[%s1578_s2 + $0x50] sm:$0xff]  ;;  %v196_v21 = vld [vmem:[%s1578_s2 + $0x48] sm:$0xff]  ;;  %v42_v22 = vld [vmem:[%s1576_s0 + $0x38] sm:$0xff] }
   0xe   :  { %756 = vmatmul.msk.f32.vlgmr.msra.gmra.mxu0 %vm57_vm0, %v35_v4  ;;  %766 = vmatmul.msk.f32.vlgmr.msra.gmra.mxu3 %vm57_vm0, %v45_v8  ;;  %v195_v23 = vld [vmem:[%s1578_s2 + $0x40] sm:$0xff]  ;;  %v49_v24 = vld [vmem:[%s1576_s0 + $0x70] sm:$0xff]  ;;  %v194_v25 = vld [vmem:[%s1578_s2 + $0x38] sm:$0xff] }
   0xf   :  { %793 = vmatpush.msrb.mxu3 %v202_v13  ;;  %206 = vmatpush.msra.mxu1 %v201_v14  ;;  %v193_v26 = vld [vmem:[%s1578_s2 + $0x30] sm:$0xff]  ;;  %v192_v27 = vld [vmem:[%s1578_s2 + $0x28] sm:$0xff]  ;;  %v43_v28 = vld [vmem:[%s1576_s0 + $0x40] sm:$0xff] }
  0x10   :  { %794 = vmatpush.msra.mxu2 %v201_v14  ;;  %v191_v29 = vld [vmem:[%s1578_s2 + $0x20] sm:$0xff]  ;;  %v50_v30 = vld [vmem:[%s1576_s0 + $0x78] sm:$0xff]  ;;  %v44_v32 = vld [vmem:[%s1576_s0 + $0x48] sm:$0xff] }
  0x11   :  { %795 = vmatpush.msrb.mxu3 %v201_v14  ;;  %207 = vmatpush.msra.mxu1 %v200_v15  ;;  %v190_v31 = vld [vmem:[%s1578_s2 + $0x18] sm:$0xff]  ;;  %v189_v33 = vld [vmem:[%s1578_s2 + $0x10] sm:$0xff]  ;;  %v188_v34 = vld [vmem:[%s1578_s2 + $0x8] sm:$0xff] }
  0x12   :  { %796 = vmatpush.msra.mxu2 %v200_v15  ;;  %v187_v35 = vld [vmem:[%s1578_s2] sm:$0xff]  ;;  %v828_v36 = vld [vmem:[%s1578_s2 + $0x88] ss:$0 sm:$0xff] }
  0x13   :  { %797 = vmatpush.msrb.mxu3 %v200_v15  ;;  %208 = vmatpush.msra.mxu1 %v199_v17 }
  0x14   :  { %798 = vmatpush.msra.mxu2 %v199_v17 }
  0x15   :  { %209 = vmatpush.msra.mxu1 %v198_v19  ;;  %799 = vmatpush.msrb.mxu3 %v199_v17 }
  0x16   :  { %757 = vmatmul.msk.f32.gmra.mxu0 %vm57_vm0, %v36_v5  ;;  %767 = vmatmul.msk.f32.gmra.mxu3 %vm57_vm0, %v46_v10 }
  0x17   :  { %800 = vmatpush.msra.mxu2 %v198_v19  ;;  %210 = vmatpush.msra.mxu1 %v197_v20 }
  0x18   :  { %801 = vmatpush.msrb.mxu3 %v198_v19 }
  0x19   :  { %802 = vmatpush.msra.mxu2 %v197_v20  ;;  %211 = vmatpush.msra.mxu1 %v196_v21 }
  0x1a   :  { %803 = vmatpush.msrb.mxu3 %v197_v20 }
  0x1b   :  { %804 = vmatpush.msra.mxu2 %v196_v21  ;;  %212 = vmatpush.msra.mxu1 %v195_v23 }
  0x1c   :  { %805 = vmatpush.msrb.mxu3 %v196_v21  ;;  %v1097_v21 = vld [vmem:[%s1578_s2 + $0x90] ss:$0 sm:$0xff] }
  0x1d   :  { %806 = vmatpush.msra.mxu2 %v195_v23  ;;  %213 = vmatpush.msra.mxu1 %v194_v25 }
  0x1e   :  { %758 = vmatmul.msk.f32.gmra.mxu0 %vm57_vm0, %v37_v6  ;;  %768 = vmatmul.msk.f32.gmra.mxu3 %vm57_vm0, %v47_v12 }
  0x1f   :  { %808 = vmatpush.msra.mxu2 %v194_v25  ;;  %214 = vmatpush.msra.mxu1 %v193_v26 }
  0x20   :  { %807 = vmatpush.msrb.mxu3 %v195_v23 }
  0x21   :  { %810 = vmatpush.msra.mxu2 %v193_v26  ;;  %215 = vmatpush.msra.mxu1 %v192_v27 }
  0x22   :  { %809 = vmatpush.msrb.mxu3 %v194_v25 }
  0x23   :  { %812 = vmatpush.msra.mxu2 %v192_v27  ;;  %216 = vmatpush.msra.mxu1 %v191_v29 }
  0x24   :  { %811 = vmatpush.msrb.mxu3 %v193_v26 }
  0x25   :  { %814 = vmatpush.msra.mxu2 %v191_v29  ;;  %217 = vmatpush.msra.mxu1 %v190_v31 }
  0x26   :  { %759 = vmatmul.msk.f32.gmra.mxu0 %vm57_vm0, %v38_v7  ;;  %769 = vmatmul.msk.f32.gmra.mxu3 %vm57_vm0, %v48_v18 }
  0x27   :  { %816 = vmatpush.msra.mxu2 %v190_v31  ;;  %813 = vmatpush.msrb.mxu3 %v192_v27 }
  0x28   :  { %218 = vmatpush.msra.mxu1 %v189_v33 }
  0x29   :  { %815 = vmatpush.msrb.mxu3 %v191_v29  ;;  %818 = vmatpush.msra.mxu2 %v189_v33 }
  0x2a   :  { %219 = vmatpush.msra.mxu1 %v188_v34 }
  0x2b   :  { %817 = vmatpush.msrb.mxu3 %v190_v31  ;;  %820 = vmatpush.msra.mxu2 %v188_v34 }
  0x2c   :  { %220 = vmatpush.msra.mxu1 %v187_v35 }
  0x2d   :  { %819 = vmatpush.msrb.mxu3 %v189_v33  ;;  %822 = vmatpush.msra.mxu2 %v187_v35 }
  0x2e   :  { %760 = vmatmul.msk.f32.gmra.mxu0 %vm57_vm0, %v39_v9  ;;  %770 = vmatmul.msk.f32.gmra.mxu3 %vm57_vm0, %v49_v24  ;;  %v1103_v24 = vld [vmem:[%s1578_s2 + $0x80] ss:$0 sm:$0xff] }
  0x2f   :  { %821 = vmatpush.msrb.mxu3 %v188_v34 }
  0x31   :  { %823 = vmatpush.msrb.mxu3 %v187_v35 }
  0x36   :  { %761 = vmatmul.msk.f32.gmra.mxu0 %vm57_vm0, %v40_v11  ;;  %771 = vmatmul.msk.f32.gmra.mxu3 %vm57_vm0, %v50_v30 }
  0x3e   :  { %762 = vmatmul.msk.f32.gmra.mxu0 %vm57_vm0, %v41_v16 }
  0x46   :  { %763 = vmatmul.msk.f32.gmra.mxu0 %vm57_vm0, %v42_v22 }
  0x4e   :  { %764 = vmatmul.msk.f32.gmra.mxu0 %vm57_vm0, %v43_v28 }
  0x56   :  { %765 = vmatmul.msk.f32.gmra.mxu0 %vm57_vm0, %v44_v32 }
  0x8b   :  { %v123_v37 = vpop.f32.mrf.mxu0 }
  0x8c   :  { %v124_v38 = vadd.f32 %v828_v36, %v123_v37 }
  0x8e   :  { %v171_v39 = vmax.f32 %v124_v38, 0.0 }
  0x90   :  { %221 = vmatmul.f32.vlgmr.msra.gmra.mxu1 %v171_v39 }
  0x91   :  { %v153_v50 = vpop.f32.mrf.mxu3 }
  0x92   :  { %v154_v13 = vadd.f32 %v828_v36, %v153_v50 }
  0x93   :  { %v126_v40 = vpop.f32.mrf.mxu0 }
  0x94   :  { %v127_v41 = vadd.f32 %v828_v36, %v126_v40  ;;  %v181_v14 = vmax.f32 %v154_v13, 0.0 }
  0x96   :  { %v172_v42 = vmax.f32 %v127_v41, 0.0 }
  0x98   :  { %224 = vmatmul.f32.gmra.mxu1 %v172_v42 }
  0x99   :  { %v156_v54 = vpop.f32.mrf.mxu3 }
  0x9a   :  { %v157_v15 = vadd.f32 %v828_v36, %v156_v54 }
  0x9b   :  { %v129_v43 = vpop.f32.mrf.mxu0 }
  0x9c   :  { %v130_v44 = vadd.f32 %v828_v36, %v129_v43  ;;  %v182_v16 = vmax.f32 %v157_v15, 0.0 }
  0x9e   :  { %v173_v45 = vmax.f32 %v130_v44, 0.0 }
  0xa0   :  { %227 = vmatmul.f32.gmra.mxu1 %v173_v45 }
  0xa1   :  { %v159_v58 = vpop.f32.mrf.mxu3 }
  0xa2   :  { %v160_v17 = vadd.f32 %v828_v36, %v159_v58 }
  0xa3   :  { %v132_v46 = vpop.f32.mrf.mxu0 }
  0xa4   :  { %v133_v47 = vadd.f32 %v828_v36, %v132_v46  ;;  %v183_v18 = vmax.f32 %v160_v17, 0.0 }
  0xa6   :  { %v174_v48 = vmax.f32 %v133_v47, 0.0 }
  0xa8   :  { %230 = vmatmul.f32.gmra.mxu1 %v174_v48 }
  0xa9   :  { %v162_v62 = vpop.f32.mrf.mxu3 }
  0xaa   :  { %v163_v19 = vadd.f32 %v828_v36, %v162_v62 }
  0xab   :  { %v135_v49 = vpop.f32.mrf.mxu0 }
  0xac   :  { %v136_v51 = vadd.f32 %v828_v36, %v135_v49  ;;  %v184_v20 = vmax.f32 %v163_v19, 0.0 }
  0xae   :  { %v175_v52 = vmax.f32 %v136_v51, 0.0 }
  0xb0   :  { %233 = vmatmul.f32.gmra.mxu1 %v175_v52 }
  0xb1   :  { %v165_v2 = vpop.f32.mrf.mxu3 }
  0xb2   :  { %v166_v4 = vadd.f32 %v828_v36, %v165_v2 }
  0xb3   :  { %v138_v53 = vpop.f32.mrf.mxu0 }
  0xb4   :  { %v139_v55 = vadd.f32 %v828_v36, %v138_v53  ;;  %v185_v6 = vmax.f32 %v166_v4, 0.0 }
  0xb6   :  { %v176_v56 = vmax.f32 %v139_v55, 0.0  ;;  %263 = vmatmul.f32.vlgmr.msrb.gmra.mxu3 %v185_v6 }
  0xb8   :  { %236 = vmatmul.f32.gmra.mxu1 %v176_v56 }
  0xb9   :  { %v168_v8 = vpop.f32.mrf.mxu3 }
  0xba   :  { %v169_v10 = vadd.f32 %v828_v36, %v168_v8 }
  0xbb   :  { %v141_v57 = vpop.f32.mrf.mxu0 }
  0xbc   :  { %v142_v59 = vadd.f32 %v828_v36, %v141_v57  ;;  %v186_v12 = vmax.f32 %v169_v10, 0.0 }
  0xbe   :  { %v177_v60 = vmax.f32 %v142_v59, 0.0  ;;  %266 = vmatmul.f32.gmra.mxu3 %v186_v12 }
  0xc0   :  { %239 = vmatmul.f32.gmra.mxu1 %v177_v60 }
  0xc3   :  { %v144_v61 = vpop.f32.mrf.mxu0 }
  0xc4   :  { %v145_v63 = vadd.f32 %v828_v36, %v144_v61 }
  0xc6   :  { %v178_v0 = vmax.f32 %v145_v63, 0.0 }
  0xc8   :  { %242 = vmatmul.f32.vlgmr.msra.gmra.mxu2 %v178_v0 }
  0xcb   :  { %v147_v1 = vpop.f32.mrf.mxu0 }
  0xcc   :  { %v148_v3 = vadd.f32 %v828_v36, %v147_v1 }
  0xce   :  { %v179_v5 = vmax.f32 %v148_v3, 0.0 }
  0xd0   :  { %245 = vmatmul.f32.gmra.mxu2 %v179_v5 }
  0xd3   :  { %v150_v7 = vpop.f32.mrf.mxu0 }
  0xd4   :  { %v151_v9 = vadd.f32 %v828_v36, %v150_v7 }
  0xd6   :  { %v180_v11 = vmax.f32 %v151_v9, 0.0 }
  0xd8   :  { %248 = vmatmul.f32.gmra.mxu2 %v180_v11 }
  0xe0   :  { %251 = vmatmul.f32.gmra.mxu2 %v181_v14 }
  0xe8   :  { %254 = vmatmul.f32.gmra.mxu2 %v182_v16 }
  0xf0   :  { %257 = vmatmul.f32.gmra.mxu2 %v183_v18 }
  0xf8   :  { %260 = vmatmul.f32.gmra.mxu2 %v184_v20 }
 0x10d   :  { %v222_v22 = vpop.f32.mrf.mxu1 }
 0x10e   :  { %v223_v23 = vadd.f32 %v1097_v21, %v222_v22 }
 0x110   :  { %v270_v25 = vmax.f32 %v223_v23, 0.0 }
 0x112   :  { %v288_v26 = vmul.f32 %v1103_v24, %v270_v25 }
 0x114   :  { %304 = vadd.xlane.f32.xlu0 %v288_v26  ;;  %v1139_v26 = vstv %s1579_s3  ;;  %s950_s3 = smov [#allocation6]  }
 0x115   :  { %v225_v27 = vpop.f32.mrf.mxu1  ;;  %s744_s11 = sshll.u32 %s950_s3, 4  ;;  %s745_s11 = int_to_ptr.vmem [resolvable:$true] %s744_s11 }
 0x116   :  { %v226_v28 = vadd.f32 %v1097_v21, %v225_v27 }
 0x118   :  { %v271_v29 = vmax.f32 %v226_v28, 0.0 }
 0x11a   :  { %v289_v30 = vmul.f32 %v1103_v24, %v271_v29 }
 0x11c   :  { %306 = vadd.xlane.f32.xlu0 %v289_v30 }
 0x11d   :  { %v228_v31 = vpop.f32.mrf.mxu1 }
 0x11e   :  { %v229_v32 = vadd.f32 %v1097_v21, %v228_v31 }
 0x120   :  { %v272_v33 = vmax.f32 %v229_v32, 0.0 }
 0x122   :  { %v290_v34 = vmul.f32 %v1103_v24, %v272_v33 }
 0x124   :  { %308 = vadd.xlane.f32.xlu1 %v290_v34 }
 0x125   :  { %v231_v35 = vpop.f32.mrf.mxu1 }
 0x126   :  { %v232_v36 = vadd.f32 %v1097_v21, %v231_v35 }
 0x128   :  { %v273_v37 = vmax.f32 %v232_v36, 0.0 }
 0x12a   :  { %v291_v38 = vmul.f32 %v1103_v24, %v273_v37 }
 0x12c   :  { %310 = vadd.xlane.f32.xlu1 %v291_v38 }
 0x12d   :  { %v234_v39 = vpop.f32.mrf.mxu1 }
 0x12e   :  { %v235_v40 = vadd.f32 %v1097_v21, %v234_v39 }
 0x130   :  { %v274_v41 = vmax.f32 %v235_v40, 0.0 }
 0x132   :  { %v292_v42 = vmul.f32 %v1103_v24, %v274_v41 }
 0x134   :  { %312 = vadd.xlane.f32.xlu2 %v292_v42 }
 0x135   :  { %v237_v43 = vpop.f32.mrf.mxu1 }
 0x136   :  { %v238_v44 = vadd.f32 %v1097_v21, %v237_v43 }
 0x138   :  { %v275_v45 = vmax.f32 %v238_v44, 0.0 }
 0x139   :  { %v264_v3 = vpop.f32.mrf.mxu3 }
 0x13a   :  { %v293_v46 = vmul.f32 %v1103_v24, %v275_v45  ;;  %v265_v7 = vadd.f32 %v1097_v21, %v264_v3 }
 0x13c   :  { %314 = vadd.xlane.f32.xlu2 %v293_v46  ;;  %v284_v9 = vmax.f32 %v265_v7, 0.0 }
 0x13d   :  { %v240_v47 = vpop.f32.mrf.mxu1 }
 0x13e   :  { %v241_v48 = vadd.f32 %v1097_v21, %v240_v47  ;;  %v302_v14 = vmul.f32 %v1103_v24, %v284_v9 }
 0x140   :  { %v276_v49 = vmax.f32 %v241_v48, 0.0 }
 0x141   :  { %v267_v11 = vpop.f32.mrf.mxu3 }
 0x142   :  { %v294_v50 = vmul.f32 %v1103_v24, %v276_v49  ;;  %v268_v15 = vadd.f32 %v1097_v21, %v267_v11 }
 0x144   :  { %316 = vadd.xlane.f32.xlu0 %v294_v50  ;;  %v285_v17 = vmax.f32 %v268_v15, 0.0 }
 0x146   :  { %v303_v22 = vmul.f32 %v1103_v24, %v285_v17 }
 0x14b   :  { %v243_v51 = vpop.f32.mrf.mxu2 }
 0x14c   :  { %v244_v52 = vadd.f32 %v1097_v21, %v243_v51 }
 0x14e   :  { %v277_v53 = vmax.f32 %v244_v52, 0.0 }
 0x150   :  { %v295_v54 = vmul.f32 %v1103_v24, %v277_v53 }
 0x152   :  { %318 = vadd.xlane.f32.xlu1 %v295_v54 }
 0x153   :  { %v246_v55 = vpop.f32.mrf.mxu2 }
 0x154   :  { %v247_v56 = vadd.f32 %v1097_v21, %v246_v55 }
 0x156   :  { %v278_v57 = vmax.f32 %v247_v56, 0.0 }
 0x158   :  { %v296_v58 = vmul.f32 %v1103_v24, %v278_v57 }
 0x15a   :  { %320 = vadd.xlane.f32.xlu2 %v296_v58 }
 0x15b   :  { %v249_v59 = vpop.f32.mrf.mxu2 }
 0x15c   :  { %v250_v60 = vadd.f32 %v1097_v21, %v249_v59 }
 0x15e   :  { %v279_v61 = vmax.f32 %v250_v60, 0.0 }
 0x160   :  { %v297_v62 = vmul.f32 %v1103_v24, %v279_v61 }
 0x162   :  { %322 = vadd.xlane.f32.xlu0 %v297_v62 }
 0x163   :  { %v252_v63 = vpop.f32.mrf.mxu2 }
 0x164   :  { %v253_v0 = vadd.f32 %v1097_v21, %v252_v63 }
 0x166   :  { %v280_v1 = vmax.f32 %v253_v0, 0.0 }
 0x168   :  { %v298_v2 = vmul.f32 %v1103_v24, %v280_v1 }
 0x16a   :  { %324 = vadd.xlane.f32.xlu1 %v298_v2 }
 0x16b   :  { %v255_v4 = vpop.f32.mrf.mxu2 }
 0x16c   :  { %v256_v5 = vadd.f32 %v1097_v21, %v255_v4  ;;  %v674_v4 = vlaneseq }
 0x16e   :  { %v281_v6 = vmax.f32 %v256_v5, 0.0  ;;  %v1187_v15 = vand.u32 127, %v674_v4 }
 0x170   :  { %v299_v8 = vmul.f32 %v1103_v24, %v281_v6 }
 0x172   :  { %326 = vadd.xlane.f32.xlu2 %v299_v8 }
 0x173   :  { %v258_v10 = vpop.f32.mrf.mxu2 }
 0x174   :  { %v259_v12 = vadd.f32 %v1097_v21, %v258_v10 }
 0x176   :  { %v282_v13 = vmax.f32 %v259_v12, 0.0 }
 0x178   :  { %v300_v16 = vmul.f32 %v1103_v24, %v282_v13 }
 0x17a   :  { %332 = vadd.xlane.f32.xlu2 %v302_v14  ;;  %328 = vadd.xlane.f32.xlu0 %v300_v16 }
 0x17b   :  { %v261_v18 = vpop.f32.mrf.mxu2 }
 0x17c   :  { %v262_v19 = vadd.f32 %v1097_v21, %v261_v18 }
 0x17e   :  { %v283_v20 = vmax.f32 %v262_v19, 0.0  ;;  %v1197_v19 = vadd.s32 4294967288, %v1187_v15 }
 0x180   :  { %v301_v23 = vmul.f32 %v1103_v24, %v283_v20 }
 0x182   :  { %330 = vadd.xlane.f32.xlu1 %v301_v23  ;;  %334 = vadd.xlane.f32.xlu0 %v303_v22  ;;  %v1201_v22 = vadd.s32 4294967280, %v1187_v15 }
 0x187   :  { %v305_v25 = vpop.xlane.xlu0 %304 }
 0x188   :  { %v338_v28 = vadd.f32 %v1139_v26, %v305_v25 }
 0x18a   :  { %v772_v30 = vmul.f32 -1.442695, %v338_v28 }
 0x18c   :  { %831 = vpow2.f32 %v772_v30 }
 0x18f   :  { %v307_v29 = vpop.xlane.xlu0 %306 }
 0x190   :  { %v339_v21 = vadd.f32 %v1139_v26, %v307_v29 }
 0x192   :  { %v773_v24 = vmul.f32 -1.442695, %v339_v21  ;;  %v832_v36 = vpop.eup %831 }
 0x193   :  { %v1146_v40 = vadd.f32 1.0, %v832_v36 }
 0x194   :  { %833 = vpow2.f32 %v773_v24 }
 0x195   :  { %v427_v11 = vand.u32 2147483647, %v1146_v40  ;;  %v429_v12 = vand.u32 2147483648, %v1146_v40  ;;  %vm423_vm2 = vweird.f32 %v1146_v40 }
 0x197   :  { %v309_v27 = vpop.xlane.xlu1 %308  ;;  %vm1203_vm3 = vcmp.eq.f32.partialorder %v427_v11, 8.507059e+37 }
 0x198   :  { %v340_v31 = vadd.f32 %v1139_v26, %v309_v27  ;;  %v430_v27 = vor.u32 1.1754944e-38, %v429_v12 }
 0x19a   :  { %v774_v34 = vmul.f32 -1.442695, %v340_v31  ;;  %v834_v41 = vpop.eup %833  ;;  %v1216_v31 = vadd.s32 4294967272, %v1187_v15 }
 0x19b   :  { %v1150_v45 = vadd.f32 1.0, %v834_v41 }
 0x19c   :  { %835 = vpow2.f32 %v774_v34 }
 0x19d   :  { %vm438_vm5 = vweird.f32 %v1150_v45  ;;  %v444_v36 = vand.u32 2147483648, %v1150_v45 }
 0x19f   :  { %v311_v33 = vpop.xlane.xlu1 %310 }
 0x1a0   :  { %v341_v35 = vadd.f32 %v1139_v26, %v311_v33 }
 0x1a2   :  { %v775_v38 = vmul.f32 -1.442695, %v341_v35  ;;  %v836_v43 = vpop.eup %835  ;;  %v442_v35 = vand.u32 2147483647, %v1150_v45 }
 0x1a3   :  { %v1152_v46 = vadd.f32 1.0, %v836_v43 }
 0x1a4   :  { %837 = vpow2.f32 %v775_v38  ;;  %vm1247_vm9 = vcmp.eq.f32.partialorder %v442_v35, 8.507059e+37 }
 0x1a5   :  { %839 = vrcp.f32 %v1146_v40  ;;  %vm453_vm10 = vweird.f32 %v1152_v46 }
 0x1a7   :  { %v313_v32 = vpop.xlane.xlu2 %312 }
 0x1a8   :  { %v342_v37 = vadd.f32 %v1139_v26, %v313_v32 }
 0x1aa   :  { %v776_v42 = vmul.f32 -1.442695, %v342_v37  ;;  %v838_v49 = vpop.eup %837 }
 0x1ab   :  { %v1157_v51 = vpop.eup %839  ;;  %v1159_v53 = vadd.f32 1.0, %v838_v49 }
 0x1ac   :  { %841 = vpow2.f32 %v776_v42  ;;  %v419_v56 = vmul.f32 %v1157_v51, %v1146_v40  ;;  %vm424_vm1 = vweird.f32 %v1157_v51  ;;  %v457_v42 = vand.u32 2147483647, %v1152_v46 }
 0x1ad   :  { %843 = vrcp.f32 %v1150_v45  ;;  %vm1210_vm4 = vmor %vm423_vm2, %vm424_vm1  ;;  %vm468_vm0 = vweird.f32 %v1159_v53  ;;  %vm687_vm1 = vcmask 261312  }
 0x1ae   :  { %845 = vrcp.f32 %v1152_v46  ;;  %v420_v62 = vsub.f32 1.0, %v419_v56  ;;  %vm1273_vm12 = vcmp.eq.f32.partialorder %v457_v42, 8.507059e+37 }
 0x1af   :  { %v315_v39 = vpop.xlane.xlu2 %314 }
 0x1b0   :  { %v343_v44 = vadd.f32 %v1139_v26, %v315_v39  ;;  %v421_v7 = vmul.f32 %v1157_v51, %v420_v62 }
 0x1b2   :  { %v777_v48 = vmul.f32 -1.442695, %v343_v44  ;;  %v842_v52 = vpop.eup %841  ;;  %v422_v17 = vadd.f32 %v1157_v51, %v421_v7 }
 0x1b3   :  { %v1164_v58 = vpop.eup %843  ;;  %v1166_v59 = vadd.f32 1.0, %v842_v52  ;;  %v459_v52 = vand.u32 2147483648, %v1152_v46 }
 0x1b4   :  { %847 = vpow2.f32 %v777_v48  ;;  %v1168_v60 = vpop.eup %845  ;;  %v434_v0 = vmul.f32 %v1164_v58, %v1150_v45  ;;  %v426_v34 = vsel %vm1210_vm4, %v1157_v51, %v422_v17  ;;  %vm439_vm6 = vweird.f32 %v1164_v58 }
 0x1b5   :  { %849 = vrcp.f32 %v1159_v53  ;;  %v449_v1 = vmul.f32 %v1168_v60, %v1152_v46  ;;  %vm454_vm7 = vweird.f32 %v1168_v60  ;;  %v1236_v44 = vsel %vm1203_vm3, %v430_v27, %v426_v34  ;;  %vm1243_vm8 = vmor %vm438_vm5, %vm439_vm6 }
 0x1b6   :  { %v435_v9 = vsub.f32 1.0, %v434_v0  ;;  %v445_v51 = vor.u32 1.1754944e-38, %v444_v36  ;;  %vm1256_vm11 = vmor %vm453_vm10, %vm454_vm7  ;;  %v1261_v45 = vadd.s32 4294967264, %v1187_v15  ;;  %v676_v46 = vperm.slane %v1236_v44, %v1187_v15 }
 0x1b7   :  { %v317_v47 = vpop.xlane.xlu0 %316  ;;  %v450_v13 = vsub.f32 1.0, %v449_v1  ;;  %vm483_vm4 = vweird.f32 %v1166_v59  ;;  %v487_v27 = vand.u32 2147483647, %v1166_v59  ;;  %vm691_vm6 = vcmask 326912  }
 0x1b8   :  { %v344_v50 = vadd.f32 %v1139_v26, %v317_v47  ;;  %v436_v20 = vmul.f32 %v1164_v58, %v435_v9 }
 0x1b9   :  { %v451_v28 = vmul.f32 %v1168_v60, %v450_v13 }
 0x1ba   :  { %v778_v55 = vmul.f32 -1.442695, %v344_v50  ;;  %v848_v61 = vpop.eup %847  ;;  %v437_v37 = vadd.f32 %v1164_v58, %v436_v20  ;;  %v489_v20 = vand.u32 2147483648, %v1166_v59 }
 0x1bb   :  { %v1176_v2 = vadd.f32 1.0, %v848_v61  ;;  %v1179_v6 = vpop.eup %849  ;;  %v452_v41 = vadd.f32 %v1168_v60, %v451_v28  ;;  %v1311_v28 = vadd.s32 4294967256, %v1187_v15 }
 0x1bc   :  { %851 = vpow2.f32 %v778_v55  ;;  %v464_v16 = vmul.f32 %v1179_v6, %v1159_v53  ;;  %vm469_vm14 = vweird.f32 %v1179_v6  ;;  %v490_v34 = vor.u32 1.1754944e-38, %v489_v20 }
 0x1bd   :  { %853 = vrcp.f32 %v1166_v59  ;;  %vm1293_vm2 = vmor %vm468_vm0, %vm469_vm14  ;;  %vm498_vm10 = vweird.f32 %v1176_v2 }
 0x1be   :  { %v465_v32 = vsub.f32 1.0, %v464_v16 }
 0x1c0   :  { %v466_v47 = vmul.f32 %v1179_v6, %v465_v32 }
 0x1c2   :  { %v852_v8 = vpop.eup %851  ;;  %v467_v0 = vadd.f32 %v1179_v6, %v466_v47 }
 0x1c3   :  { %v1185_v14 = vpop.eup %853  ;;  %v1193_v18 = vadd.f32 1.0, %v852_v8  ;;  %v472_v8 = vand.u32 2147483647, %v1159_v53 }
 0x1c4   :  { %v479_v29 = vmul.f32 %v1185_v14, %v1166_v59  ;;  %vm484_vm3 = vweird.f32 %v1185_v14  ;;  %v471_v17 = vsel %vm1293_vm2, %v1179_v6, %v467_v0 }
 0x1c5   :  { %v319_v54 = vpop.xlane.xlu1 %318  ;;  %vm473_vm5 = vcmp.eq.f32.partialorder %v472_v8, 8.507059e+37  ;;  %vm1317_vm7 = vmor %vm483_vm4, %vm484_vm3  ;;  %vm699_vm3 = vcmask 458112  }
 0x1c6   :  { %v345_v57 = vadd.f32 %v1139_v26, %v319_v54  ;;  %v480_v43 = vsub.f32 1.0, %v479_v29  ;;  %v441_v54 = vsel %vm1243_vm8, %v1164_v58, %v437_v37  ;;  %v456_v58 = vsel %vm1256_vm11, %v1168_v60, %v452_v41 }
 0x1c7   :  { %v446_v4 = vsel %vm1247_vm9, %v445_v51, %v441_v54  ;;  %v460_v60 = vor.u32 1.1754944e-38, %v459_v52  ;;  %vm488_vm9 = vcmp.eq.f32.partialorder %v487_v27, 8.507059e+37  ;;  %v504_v37 = vand.u32 2147483648, %v1176_v2 }
 0x1c8   :  { %v779_v63 = vmul.f32 -1.442695, %v345_v57  ;;  %v481_v62 = vmul.f32 %v1185_v14, %v480_v43  ;;  %v678_v29 = vperm.slane %v446_v4, %v1197_v19  ;;  %vm695_vm11 = vcmask 392512  }
 0x1c9   :  { %v461_v11 = vsel %vm1273_vm12, %v460_v60, %v456_v58  ;;  %v1351_v51 = vadd.s32 4294967248, %v1187_v15  ;;  %v505_v55 = vor.u32 1.1754944e-38, %v504_v37 }
 0x1ca   :  { %855 = vpow2.f32 %v779_v63  ;;  %v482_v13 = vadd.f32 %v1185_v14, %v481_v62  ;;  %v680_v44 = vsel %vm679_vm13, %v678_v29, %v676_v46  ;;  %v517_v46 = vand.u32 2147483647, %v1193_v18 }
 0x1cb   :  { %857 = vrcp.f32 %v1176_v2 }
 0x1cc   :  { %v486_v59 = vsel %vm1317_vm7, %v1185_v14, %v482_v13  ;;  %v502_v14 = vand.u32 2147483647, %v1176_v2  ;;  %vm703_vm7 = vcmask 523712  }
 0x1cd   :  { %v321_v3 = vpop.xlane.xlu2 %320  ;;  %v491_v41 = vsel %vm488_vm9, %v490_v34, %v486_v59 }
 0x1ce   :  { %v346_v5 = vadd.f32 %v1139_v26, %v321_v3  ;;  %v690_v54 = vperm.slane %v491_v41, %v1261_v45  ;;  %vm503_vm13 = vcmp.eq.f32.partialorder %v502_v14, 8.507059e+37 }
 0x1d0   :  { %v780_v10 = vmul.f32 -1.442695, %v346_v5  ;;  %v856_v23 = vpop.eup %855  ;;  %v474_v5 = vand.u32 2147483648, %v1159_v53 }
 0x1d1   :  { %v1219_v33 = vpop.eup %857  ;;  %v1229_v38 = vadd.f32 1.0, %v856_v23 }
 0x1d2   :  { %859 = vpow2.f32 %v780_v10  ;;  %v494_v48 = vmul.f32 %v1219_v33, %v1176_v2  ;;  %v475_v25 = vor.u32 1.1754944e-38, %v474_v5  ;;  %vm499_vm8 = vweird.f32 %v1219_v33 }
 0x1d3   :  { %861 = vrcp.f32 %v1193_v18  ;;  %vm1338_vm12 = vmor %vm498_vm10, %vm499_vm8  ;;  %vm528_vm4 = vweird.f32 %v1229_v38 }
 0x1d4   :  { %v495_v1 = vsub.f32 1.0, %v494_v48  ;;  %v476_v32 = vsel %vm473_vm5, %v475_v25, %v471_v17 }
 0x1d5   :  { %v323_v30 = vpop.xlane.xlu0 %322 }
 0x1d6   :  { %v347_v24 = vadd.f32 %v1139_v26, %v323_v30  ;;  %v496_v23 = vmul.f32 %v1219_v33, %v495_v1  ;;  %v682_v30 = vperm.slane %v461_v11, %v1201_v22  ;;  %v519_v1 = vand.u32 2147483648, %v1193_v18 }
 0x1d8   :  { %v781_v39 = vmul.f32 -1.442695, %v347_v24  ;;  %v860_v40 = vpop.eup %859  ;;  %v497_v35 = vadd.f32 %v1219_v33, %v496_v23  ;;  %v684_v2 = vsel %vm683_vm15, %v682_v30, %v680_v44  ;;  %vm513_vm15 = vweird.f32 %v1193_v18 }
 0x1d9   :  { %v1264_v56 = vadd.f32 1.0, %v860_v40  ;;  %v1266_v57 = vpop.eup %861  ;;  %v686_v40 = vperm.slane %v476_v32, %v1216_v31  ;;  %v520_v29 = vor.u32 1.1754944e-38, %v519_v1  ;;  %v1459_v1 = vadd.s32 4294967216, %v1187_v15 }
 0x1da   :  { %863 = vpow2.f32 %v781_v39  ;;  %v509_v9 = vmul.f32 %v1266_v57, %v1193_v18  ;;  %v501_v31 = vsel %vm1338_vm12, %v1219_v33, %v497_v35  ;;  %vm514_vm14 = vweird.f32 %v1266_v57 }
 0x1db   :  { %865 = vrcp.f32 %v1229_v38  ;;  %v688_v58 = vsel %vm687_vm1, %v686_v40, %v684_v2  ;;  %v506_v33 = vsel %vm503_vm13, %v505_v55, %v501_v31  ;;  %vm1369_vm0 = vmor %vm513_vm15, %vm514_vm14  ;;  %vm1373_vm1 = vcmp.eq.f32.partialorder %v517_v46, 8.507059e+37 }
 0x1dc   :  { %867 = vrcp.f32 %v1264_v56  ;;  %v510_v21 = vsub.f32 1.0, %v509_v9  ;;  %v692_v5 = vsel %vm691_vm6, %v690_v54, %v688_v58  ;;  %v1378_v9 = vadd.s32 4294967240, %v1187_v15 }
 0x1dd   :  { %v325_v63 = vpop.xlane.xlu1 %324  ;;  %v1381_v18 = vadd.s32 4294967232, %v1187_v15  ;;  %v694_v11 = vperm.slane %v506_v33, %v1311_v28  ;;  %v534_v28 = vand.u32 2147483648, %v1229_v38  ;;  %v547_v6 = vand.u32 2147483647, %v1264_v56 }
 0x1de   :  { %v348_v3 = vadd.f32 %v1139_v26, %v325_v63  ;;  %v511_v42 = vmul.f32 %v1266_v57, %v510_v21  ;;  %v549_v34 = vand.u32 2147483648, %v1264_v56  ;;  %vm543_vm9 = vweird.f32 %v1264_v56 }
 0x1df   :  { %v696_v21 = vsel %vm695_vm11, %v694_v11, %v692_v5  ;;  %v535_v14 = vor.u32 1.1754944e-38, %v534_v28  ;;  %vm1419_vm10 = vcmp.eq.f32.partialorder %v547_v6, 8.507059e+37  ;;  %vm707_vm15 = vcmask 589312  }
 0x1e0   :  { %v864_v7 = vpop.eup %863  ;;  %v782_v10 = vmul.f32 -1.442695, %v348_v3  ;;  %v512_v61 = vadd.f32 %v1266_v57, %v511_v42  ;;  %v550_v2 = vor.u32 1.1754944e-38, %v549_v34  ;;  %v1505_v34 = vadd.s32 4294967184, %v1187_v15 }
 0x1e1   :  { %v1299_v53 = vadd.f32 1.0, %v864_v7  ;;  %v1301_v16 = vpop.eup %865 }
 0x1e2   :  { %869 = vpow2.f32 %v782_v10  ;;  %v524_v24 = vmul.f32 %v1301_v16, %v1229_v38  ;;  %v1327_v22 = vpop.eup %867  ;;  %v516_v12 = vsel %vm1369_vm0, %v1266_v57, %v512_v61  ;;  %vm529_vm2 = vweird.f32 %v1301_v16 }
 0x1e3   :  { %871 = vrcp.f32 %v1299_v53  ;;  %v539_v49 = vmul.f32 %v1327_v22, %v1264_v56  ;;  %v532_v57 = vand.u32 2147483647, %v1229_v38  ;;  %v521_v32 = vsel %vm1373_vm1, %v520_v29, %v516_v12  ;;  %vm1402_vm5 = vmor %vm528_vm4, %vm529_vm2 }
 0x1e4   :  { %v525_v48 = vsub.f32 1.0, %v524_v24  ;;  %vm544_vm6 = vweird.f32 %v1327_v22  ;;  %v698_v41 = vperm.slane %v521_v32, %v1351_v51  ;;  %vm558_vm12 = vweird.f32 %v1299_v53 }
 0x1e5   :  { %v327_v19 = vpop.xlane.xlu2 %326  ;;  %v540_v63 = vsub.f32 1.0, %v539_v49  ;;  %vm533_vm8 = vcmp.eq.f32.partialorder %v532_v57, 8.507059e+37  ;;  %vm1425_vm11 = vmor %vm543_vm9, %vm544_vm6  ;;  %v562_v58 = vand.u32 2147483647, %v1299_v53  ;;  %vm711_vm0 = vcmask 654912  }
 0x1e6   :  { %v349_v36 = vadd.f32 %v1139_v26, %v327_v19  ;;  %v526_v62 = vmul.f32 %v1301_v16, %v525_v48  ;;  %vm715_vm9 = vcmask 720512  }
 0x1e7   :  { %v541_v25 = vmul.f32 %v1327_v22, %v540_v63  ;;  %v700_v63 = vsel %vm699_vm3, %v698_v41, %v696_v21  ;;  %vm563_vm1 = vcmp.eq.f32.partialorder %v562_v58, 8.507059e+37 }
 0x1e8   :  { %v870_v39 = vpop.eup %869  ;;  %v783_v43 = vmul.f32 -1.442695, %v349_v36  ;;  %v527_v23 = vadd.f32 %v1301_v16, %v526_v62 }
 0x1e9   :  { %v1344_v50 = vadd.f32 1.0, %v870_v39  ;;  %v1353_v52 = vpop.eup %871  ;;  %v542_v19 = vadd.f32 %v1327_v22, %v541_v25 }
 0x1ea   :  { %873 = vpow2.f32 %v783_v43  ;;  %v554_v3 = vmul.f32 %v1353_v52, %v1299_v53  ;;  %v531_v38 = vsel %vm1402_vm5, %v1301_v16, %v527_v23  ;;  %vm559_vm13 = vweird.f32 %v1353_v52 }
 0x1eb   :  { %875 = vrcp.f32 %v1344_v50  ;;  %v536_v43 = vsel %vm533_vm8, %v535_v14, %v531_v38  ;;  %v546_v56 = vsel %vm1425_vm11, %v1327_v22, %v542_v19  ;;  %v564_v22 = vand.u32 2147483648, %v1299_v53  ;;  %vm1454_vm14 = vmor %vm558_vm12, %vm559_vm13 }
 0x1ec   :  { %v555_v30 = vsub.f32 1.0, %v554_v3  ;;  %v702_v46 = vperm.slane %v536_v43, %v1378_v9  ;;  %v551_v61 = vsel %vm1419_vm10, %v550_v2, %v546_v56  ;;  %v579_v7 = vand.u32 2147483648, %v1344_v50 }
 0x1ed   :  { %v333_v0 = vpop.xlane.xlu2 %332  ;;  %v329_v45 = vpop.xlane.xlu0 %328  ;;  %v706_v5 = vperm.slane %v551_v61, %v1381_v18  ;;  %v565_v53 = vor.u32 1.1754944e-38, %v564_v22  ;;  %vm573_vm3 = vweird.f32 %v1344_v50  ;;  %v1477_v18 = vadd.s32 4294967208, %v1187_v15 }
 0x1ee   :  { %v352_v4 = vadd.f32 %v1139_v26, %v333_v0  ;;  %v350_v60 = vadd.f32 %v1139_v26, %v329_v45  ;;  %v556_v37 = vmul.f32 %v1353_v52, %v555_v30  ;;  %v709_v0 = vadd.s32 4294967224, %v1187_v15 }
 0x1ef   :  { %v1502_v19 = vadd.s32 4294967200, %v1187_v15  ;;  %vm719_vm13 = vcmask 786112  }
 0x1f0   :  { %v874_v10 = vpop.eup %873  ;;  %v786_v13 = vmul.f32 -1.442695, %v352_v4  ;;  %v784_v17 = vmul.f32 -1.442695, %v350_v60  ;;  %v557_v54 = vadd.f32 %v1353_v52, %v556_v37  ;;  %v577_v4 = vand.u32 2147483647, %v1344_v50 }
 0x1f1   :  { %v1387_v20 = vpop.eup %875  ;;  %v1392_v27 = vadd.f32 1.0, %v874_v10  ;;  %v704_v10 = vsel %vm703_vm7, %v702_v46, %v700_v63 }
 0x1f2   :  { %877 = vpow2.f32 %v786_v13  ;;  %v569_v24 = vmul.f32 %v1387_v20, %v1344_v50  ;;  %v561_v3 = vsel %vm1454_vm14, %v1353_v52, %v557_v54  ;;  %vm574_vm2 = vweird.f32 %v1387_v20 }
 0x1f3   :  { %879 = vrcp.f32 %v1392_v27  ;;  %v566_v11 = vsel %vm563_vm1, %v565_v53, %v561_v3  ;;  %vm1479_vm4 = vcmp.eq.f32.partialorder %v577_v4, 8.507059e+37  ;;  %v592_v25 = vand.u32 2147483647, %v1392_v27  ;;  %vm1487_vm5 = vmor %vm573_vm3, %vm574_vm2 }
 0x1f4   :  { %881 = vpow2.f32 %v784_v17  ;;  %v570_v47 = vsub.f32 1.0, %v569_v24  ;;  %v580_v50 = vor.u32 1.1754944e-38, %v579_v7  ;;  %v594_v30 = vand.u32 2147483648, %v1392_v27 }
 0x1f5   :  { %v331_v35 = vpop.xlane.xlu1 %330  ;;  %v335_v36 = vpop.xlane.xlu0 %334  ;;  %v708_v57 = vsel %vm707_vm15, %v706_v5, %v704_v10  ;;  %v710_v21 = vperm.slane %v566_v11, %v709_v0  ;;  %vm588_vm6 = vweird.f32 %v1392_v27  ;;  %vm1509_vm8 = vcmp.eq.f32.partialorder %v592_v25, 8.507059e+37 }
 0x1f6   :  { %v351_v39 = vadd.f32 %v1139_v26, %v331_v35  ;;  %v353_v40 = vadd.f32 %v1139_v26, %v335_v36  ;;  %v571_v33 = vmul.f32 %v1387_v20, %v570_v47  ;;  %v595_v14 = vor.u32 1.1754944e-38, %v594_v30 }
 0x1f7   :  { %v712_v16 = vsel %vm711_vm0, %v710_v21, %v708_v57  ;;  %vm723_vm14 = vcmask 851712   ;;  %vm727_vm1 = vcmask 917312  }
 0x1f8   :  { %v878_v42 = vpop.eup %877  ;;  %v785_v48 = vmul.f32 -1.442695, %v351_v39  ;;  %v787_v26 = vmul.f32 -1.442695, %v353_v40  ;;  %v572_v9 = vadd.f32 %v1387_v20, %v571_v33 }
 0x1f9   :  { %v1429_v49 = vpop.eup %879  ;;  %v1435_v31 = vadd.f32 1.0, %v878_v42  ;;  %v1523_v42 = vadd.s32 4294967192, %v1187_v15 }
 0x1fa   :  { %v882_v51 = vpop.eup %881  ;;  %v584_v55 = vmul.f32 %v1429_v49, %v1392_v27  ;;  %883 = vpow2.f32 %v785_v48  ;;  %v576_v32 = vsel %vm1487_vm5, %v1387_v20, %v572_v9  ;;  %vm589_vm7 = vweird.f32 %v1429_v49 }
 0x1fb   :  { %885 = vrcp.f32 %v1435_v31  ;;  %v1448_v62 = vadd.f32 1.0, %v882_v51  ;;  %v1516_v20 = vsel %vm1479_vm4, %v580_v50, %v576_v32  ;;  %v639_v40 = vand.u32 2147483648, %v1435_v31  ;;  %vm1527_vm10 = vmor %vm588_vm6, %vm589_vm7 }
 0x1fc   :  { %887 = vpow2.f32 %v787_v26  ;;  %v585_v60 = vsub.f32 1.0, %v584_v55  ;;  %vm633_vm11 = vweird.f32 %v1435_v31  ;;  %v714_v26 = vperm.slane %v1516_v20, %v1459_v1 }
 0x1fd   :  { %889 = vrcp.f32 %v1448_v62  ;;  %v609_v41 = vand.u32 2147483648, %v1448_v62  ;;  %v607_v48 = vand.u32 2147483647, %v1448_v62  ;;  %v637_v2 = vand.u32 2147483647, %v1435_v31 }
 0x1fe   :  { %v586_v23 = vmul.f32 %v1429_v49, %v585_v60  ;;  %vm603_vm15 = vweird.f32 %v1448_v62  ;;  %v640_v46 = vor.u32 1.1754944e-38, %v639_v40  ;;  %v716_v17 = vsel %vm715_vm9, %v714_v26, %v712_v16 }
 0x1ff   :  { %v610_v58 = vor.u32 1.1754944e-38, %v609_v41  ;;  %vm608_vm3 = vcmp.eq.f32.partialorder %v607_v48, 8.507059e+37  ;;  %vm638_vm7 = vcmp.eq.f32.partialorder %v637_v2, 8.507059e+37  ;;  %vm735_vm9 = vcmask 1048512  }
 0x200   :  { %v884_v8 = vpop.eup %883  ;;  %v587_v35 = vadd.f32 %v1429_v49, %v586_v23 }
 0x201   :  { %v1471_v52 = vpop.eup %885  ;;  %v1474_v12 = vadd.f32 1.0, %v884_v8 }
 0x202   :  { %v888_v13 = vpop.eup %887  ;;  %v629_v29 = vmul.f32 %v1471_v52, %v1435_v31  ;;  %v591_v56 = vsel %vm1527_vm10, %v1429_v49, %v587_v35  ;;  %vm634_vm0 = vweird.f32 %v1471_v52 }
 0x203   :  { %891 = vrcp.f32 %v1474_v12  ;;  %v890_v6 = vpop.eup %889  ;;  %v1497_v24 = vadd.f32 1.0, %v888_v13  ;;  %v624_v49 = vand.u32 2147483648, %v1474_v12  ;;  %v596_v61 = vsel %vm1509_vm8, %v595_v14, %v591_v56  ;;  %vm1553_vm5 = vmor %vm633_vm11, %vm634_vm0 }
 0x204   :  { %v630_v59 = vsub.f32 1.0, %v629_v29  ;;  %v599_v38 = vmul.f32 %v890_v6, %v1448_v62  ;;  %vm604_vm12 = vweird.f32 %v890_v6  ;;  %v622_v0 = vand.u32 2147483647, %v1474_v12 }
 0x205   :  { %893 = vrcp.f32 %v1497_v24  ;;  %vm605_vm2 = vmor %vm603_vm15, %vm604_vm12  ;;  %vm618_vm6 = vweird.f32 %v1474_v12  ;;  %v625_v5 = vor.u32 1.1754944e-38, %v624_v49  ;;  %v654_v53 = vand.u32 2147483648, %v1497_v24 }
 0x206   :  { %v631_v37 = vmul.f32 %v1471_v52, %v630_v59  ;;  %v600_v39 = vsub.f32 1.0, %v599_v38  ;;  %v718_v7 = vperm.slane %v596_v61, %v1477_v18  ;;  %v652_v8 = vand.u32 2147483647, %v1497_v24 }
 0x207   :  { %vm623_vm11 = vcmp.eq.f32.partialorder %v622_v0, 8.507059e+37  ;;  %vm648_vm12 = vweird.f32 %v1497_v24  ;;  %v655_v18 = vor.u32 1.1754944e-38, %v654_v53  ;;  %vm731_vm0 = vcmask 982912  }
 0x208   :  { %v601_v47 = vmul.f32 %v890_v6, %v600_v39  ;;  %v632_v54 = vadd.f32 %v1471_v52, %v631_v37  ;;  %v720_v23 = vsel %vm719_vm13, %v718_v7, %v716_v17 }
 0x209   :  { %v892_v43 = vpop.eup %891 }
 0x20a   :  { %v614_v27 = vmul.f32 %v892_v43, %v1474_v12  ;;  %v602_v51 = vadd.f32 %v890_v6, %v601_v47  ;;  %vm619_vm4 = vweird.f32 %v892_v43  ;;  %v636_v4 = vsel %vm1553_vm5, %v1471_v52, %v632_v54 }
 0x20b   :  { %v894_v55 = vpop.eup %893  ;;  %vm620_vm8 = vmor %vm618_vm6, %vm619_vm4  ;;  %v641_v11 = vsel %vm638_vm7, %v640_v46, %v636_v4  ;;  %v733_v12 = vadd.s32 4294967176, %v1187_v15 }
 0x20c   :  { %v615_v22 = vsub.f32 1.0, %v614_v27  ;;  %v644_v33 = vmul.f32 %v894_v55, %v1497_v24  ;;  %v606_v62 = vsel %vm605_vm2, %v890_v6, %v602_v51  ;;  %vm649_vm10 = vweird.f32 %v894_v55 }
 0x20d   :  { %v611_v45 = vsel %vm608_vm3, %v610_v58, %v606_v62  ;;  %vm650_vm15 = vmor %vm648_vm12, %vm649_vm10  ;;  %vm653_vm2 = vcmp.eq.f32.partialorder %v652_v8, 8.507059e+37  ;;  %v730_v50 = vperm.slane %v641_v11, %v1505_v34 }
 0x20e   :  { %v616_v63 = vmul.f32 %v892_v43, %v615_v22  ;;  %v645_v3 = vsub.f32 1.0, %v644_v33  ;;  %v722_v9 = vperm.slane %v611_v45, %v1502_v19 }
 0x210   :  { %v617_v60 = vadd.f32 %v892_v43, %v616_v63  ;;  %v646_v31 = vmul.f32 %v894_v55, %v645_v3  ;;  %v724_v28 = vsel %vm723_vm14, %v722_v9, %v720_v23 }
 0x212   :  { %v621_v10 = vsel %vm620_vm8, %v892_v43, %v617_v60  ;;  %v647_v13 = vadd.f32 %v894_v55, %v646_v31 }
 0x213   :  { %v626_v52 = vsel %vm623_vm11, %v625_v5, %v621_v10 }
 0x214   :  { %v726_v25 = vperm.slane %v626_v52, %v1523_v42  ;;  %v651_v29 = vsel %vm650_vm15, %v894_v55, %v647_v13 }
 0x215   :  { %v656_v15 = vsel %vm653_vm2, %v655_v18, %v651_v29 }
 0x216   :  { %v728_v30 = vsel %vm727_vm1, %v726_v25, %v724_v28  ;;  %v734_v6 = vperm.slane %v656_v15, %v733_v12 }
 0x217   :  { %v732_v57 = vsel %vm731_vm0, %v730_v50, %v728_v30 }
 0x218   :  { %v736_v21 = vsel %vm735_vm9, %v734_v6, %v732_v57 }
 0x219   :  { %738 = vst [vmem:[#allocation6] sm:$0x1] %v736_v21 }
 0x21a   :  { %749 = dma.vmem_to_hbm [thread:$0]  %s745_s11, 16, %s747_s14, [#allocation5]  }
 0x21b   :  { %945 = dma.done.wait [#allocation5], 16  }
 0x21c   :  { %946 = vsyncadd [#allocation5], 4294967280 }
 0x21d   :  { %754 = vsyncpa [#allocation4], 1 }
 0x21e   :  { %755 = vsyncpa [#allocation5], 1 }

</bundles_post_ra>
